<compile_context>
chip_gen: v5e
topology: v5e:2x2
jax: 0.10.0
libtpu: 0.0.40
codegen_flags: <defaults>
</compile_context>

<pallas_src>
import jax
import jax.numpy as jnp
from jax.experimental import pallas as pl
from jax.experimental.pallas import tpu as pltpu


def _self_attention_kernel(x_ref, w_ref, b_ref, out_ref):
    # x_ref:  (TB, S, D_in)      TB batch elements per grid step
    # w_ref:  (D_in, 3*D_out)    fused [Wq | Wk | Wv]
    # b_ref:  (1, 3*D_out)       fused [bq | bk | bv]
    # out_ref:(TB, D_out)
    TB, S, D_in = x_ref.shape
    D_out = out_ref.shape[-1]

    # Fused QKV projection: one (TB*S, D_in) @ (D_in, 3*D_out) MXU matmul.
    x2 = x_ref[...].reshape(TB * S, D_in)
    qkv = jnp.dot(x2, w_ref[...], preferred_element_type=jnp.float32) + b_ref[...]
    qkv = qkv.reshape(TB, S, 3 * D_out)

    q = qkv[:, :, :D_out]
    k = qkv[:, :, D_out:2 * D_out]
    v = qkv[:, :, 2 * D_out:]

    scale = 1.0 / (float(D_out) ** 0.5)

    # Batched attention scores (TB, S, S); contract last dims, no explicit k.T.
    scores = jnp.einsum("bqd,bkd->bqk", q, k,
                        preferred_element_type=jnp.float32) * scale

    # Numerically stable softmax along the last axis (matches torch.softmax).
    m = jnp.max(scores, axis=-1, keepdims=True)
    e = jnp.exp(scores - m)
    denom = jnp.sum(e, axis=-1, keepdims=True)
    attn = e * pl.reciprocal(denom, approx=True)          # (TB, S, S), EUP recip

    # mean_q(attn @ v) == mean_q(attn) @ v  -> tiny (TB,1,S)@(TB,S,D) epilogue.
    attn_mean = jnp.mean(attn, axis=1, keepdims=True)     # (TB, 1, S)
    weighted = jnp.einsum("bqs,bsd->bqd", attn_mean, v,
                          preferred_element_type=jnp.float32)  # (TB, 1, D_out)

    out_ref[...] = weighted.reshape(TB, D_out).astype(out_ref.dtype)


def self_attention_pallas(x, wq, bq, wk, bk, wv, bv, *, block_b=None):
    """x: (B, S, D_in); w*: (D_in, D_out); b*: (D_out,). Returns (B, D_out)."""
    B, S, D_in = x.shape
    D_out = wq.shape[1]

    # Fuse QKV parameters: (D_in, 3*D_out) and (1, 3*D_out).
    w_qkv = jnp.concatenate([wq, wk, wv], axis=1)
    b_qkv = jnp.concatenate([bq, bk, bv], axis=0).reshape(1, 3 * D_out)

    # Pick a batch tile so TB*S ~ 128 MXU rows; keep the tile sublane-friendly
    # (multiple of 8, or equal to the full batch when B < 8).
    if block_b is None:
        tb = max(1, 128 // max(S, 1))
    else:
        tb = block_b
    if B >= 8:
        tb = max(8, (tb // 8) * 8)
    tb = min(tb, B)

    b_pad = pl.cdiv(B, tb) * tb
    if b_pad != B:
        # zero-pad batch; padded rows give a uniform softmax (no NaNs) and are
        # sliced off below.
        x = jnp.pad(x, ((0, b_pad - B), (0, 0), (0, 0)))

    grid = (b_pad // tb,)

    out = pl.pallas_call(
        _self_attention_kernel,
        out_shape=jax.ShapeDtypeStruct((b_pad, D_out), x.dtype),
        grid_spec=pltpu.PrefetchScalarGridSpec(
            num_scalar_prefetch=0,
            grid=grid,
            in_specs=[
                pl.BlockSpec((tb, S, D_in), lambda b: (b, 0, 0)),      # x tile
                pl.BlockSpec((D_in, 3 * D_out), lambda b: (0, 0)),     # fused W
                pl.BlockSpec((1, 3 * D_out), lambda b: (0, 0)),        # fused b
            ],
            out_specs=pl.BlockSpec((tb, D_out), lambda b: (b, 0)),     # dense 2-D
        ),
        compiler_params=pltpu.CompilerParams(
            dimension_semantics=("parallel",)),
    )(x, w_qkv, b_qkv)

    return out[:B]


def self_attention_ref(x, wq, bq, wk, bk, wv, bv):
    q = x @ wq + bq
    k = x @ wk + bk
    v = x @ wv + bv
    d_out = wq.shape[1]
    scores = jnp.einsum("bqd,bkd->bqk", q, k) / (d_out ** 0.5)
    attn = jax.nn.softmax(scores, axis=-1)
    weighted = jnp.einsum("bqk,bkd->bqd", attn, v)
    return jnp.mean(weighted, axis=1)


if __name__ == "__main__":
    B, S, D_in, D_out = 2, 8, 32, 32

    key = jax.random.PRNGKey(0)
    kx, kq, kbq, kk, kbk, kv, kbv = jax.random.split(key, 7)

    x = jax.random.normal(kx, (B, S, D_in), dtype=jnp.float32)

    # deterministic init mimicking nn.Linear default: U(-1/sqrt(D_in), 1/sqrt(D_in))
    bound = 1.0 / (D_in ** 0.5)
    wq = jax.random.uniform(kq, (D_in, D_out), jnp.float32, -bound, bound)
    bq = jax.random.uniform(kbq, (D_out,), jnp.float32, -bound, bound)
    wk = jax.random.uniform(kk, (D_in, D_out), jnp.float32, -bound, bound)
    bk = jax.random.uniform(kbk, (D_out,), jnp.float32, -bound, bound)
    wv = jax.random.uniform(kv, (D_in, D_out), jnp.float32, -bound, bound)
    bv = jax.random.uniform(kbv, (D_out,), jnp.float32, -bound, bound)

    out = self_attention_pallas(x, wq, bq, wk, bk, wv, bv)
    out = jax.block_until_ready(out)

    ref = self_attention_ref(x, wq, bq, wk, bk, wv, bv)
    assert out.shape == (B, D_out), out.shape
    # approx EUP reciprocal in the softmax -> slightly looser tolerance than f32 exact
    assert jnp.allclose(out, ref, atol=2e-3, rtol=2e-3), \
        f"max abs err {jnp.max(jnp.abs(out - ref))}"

    print("KERNEL_OK")
</pallas_src>

<mosaic_0001>
module attributes {stable_mosaic.version = 11 : i64} {
  func.func @_self_attention_kernel(%arg0: i32, %arg1: memref<2x8x32xf32, #tpu.memory_space<vmem>>, %arg2: memref<32x96xf32, #tpu.memory_space<vmem>>, %arg3: memref<1x96xf32, #tpu.memory_space<vmem>>, %arg4: memref<2x32xf32, #tpu.memory_space<vmem>>) attributes {dimension_semantics = [#tpu.dimension_semantics<parallel>], iteration_bounds = array<i64: 1>, scalar_prefetch = 0 : i64, scratch_operands = 0 : i64, tpu.core_type = #tpu.core_type<tc>, window_params = [{transform_indices = @transform_0, window_bounds = array<i64: 2, 8, 32>}, {pipeline_mode = #tpu.pipeline_mode<synchronous>, transform_indices = @transform_1, window_bounds = array<i64: 32, 96>}, {pipeline_mode = #tpu.pipeline_mode<synchronous>, transform_indices = @transform_2, window_bounds = array<i64: 1, 96>}, {transform_indices = @transform_3, window_bounds = array<i64: 2, 32>}]} {
    %c0 = arith.constant 0 : index
    %c0_0 = arith.constant 0 : index
    %c0_1 = arith.constant 0 : index
    %0 = vector.load %arg1[%c0, %c0_0, %c0_1] : memref<2x8x32xf32, #tpu.memory_space<vmem>>, vector<2x8x32xf32>
    %1 = vector.shape_cast %0 : vector<2x8x32xf32> to vector<16x32xf32>
    %c0_2 = arith.constant 0 : index
    %c0_3 = arith.constant 0 : index
    %2 = vector.load %arg2[%c0_2, %c0_3] : memref<32x96xf32, #tpu.memory_space<vmem>>, vector<32x96xf32>
    %cst = arith.constant dense<0.000000e+00> : vector<16x96xf32>
    %3 = tpu.matmul %1, %2, %cst {dimension_numbers = #tpu.dot_dimension_numbers<[1], [0], [0], [1], [0, 0, 1, 1], [], []>} : vector<16x32xf32>, vector<32x96xf32>, vector<16x96xf32> -> vector<16x96xf32>
    %c0_4 = arith.constant 0 : index
    %c0_5 = arith.constant 0 : index
    %4 = vector.load %arg3[%c0_4, %c0_5] : memref<1x96xf32, #tpu.memory_space<vmem>>, vector<1x96xf32>
    %5 = vector.broadcast %4 : vector<1x96xf32> to vector<16x96xf32>
    %6 = arith.addf %3, %5 : vector<16x96xf32>
    %7 = vector.shape_cast %6 : vector<16x96xf32> to vector<2x8x96xf32>
    %8 = vector.extract_strided_slice %7 {offsets = [0, 0, 0], sizes = [2, 8, 32], strides = [1, 1, 1]} : vector<2x8x96xf32> to vector<2x8x32xf32>
    %9 = vector.extract_strided_slice %7 {offsets = [0, 0, 32], sizes = [2, 8, 32], strides = [1, 1, 1]} : vector<2x8x96xf32> to vector<2x8x32xf32>
    %10 = vector.extract_strided_slice %7 {offsets = [0, 0, 64], sizes = [2, 8, 32], strides = [1, 1, 1]} : vector<2x8x96xf32> to vector<2x8x32xf32>
    "tpu.trace_start"() <{level = 10 : i32, message = "bqd,bkd->bqk"}> : () -> ()
    %cst_6 = arith.constant dense<0.000000e+00> : vector<2x8x8xf32>
    %11 = tpu.matmul %8, %9, %cst_6 {dimension_numbers = #tpu.dot_dimension_numbers<[2], [2], [1], [1], [0, 0, 0, 1, 1, 1], [0], [0]>} : vector<2x8x32xf32>, vector<2x8x32xf32>, vector<2x8x8xf32> -> vector<2x8x8xf32>
    "tpu.trace_stop"() : () -> ()
    %cst_7 = arith.constant 0.176776692 : f32
    %12 = vector.broadcast %cst_7 : f32 to vector<2x8x8xf32>
    %13 = arith.mulf %11, %12 : vector<2x8x8xf32>
    %cst_8 = arith.constant dense<0xFF800000> : vector<2x8xf32>
    %14 = vector.multi_reduction <maximumf>, %13, %cst_8 [2] : vector<2x8x8xf32> to vector<2x8xf32>
    %15 = vector.shape_cast %14 : vector<2x8xf32> to vector<2x8x1xf32>
    %16 = vector.broadcast %15 : vector<2x8x1xf32> to vector<2x8x8xf32>
    %17 = arith.subf %13, %16 : vector<2x8x8xf32>
    %18 = math.exp %17 : vector<2x8x8xf32>
    %cst_9 = arith.constant dense<0.000000e+00> : vector<2x8xf32>
    %19 = vector.multi_reduction <add>, %18, %cst_9 [2] : vector<2x8x8xf32> to vector<2x8xf32>
    %20 = vector.shape_cast %19 : vector<2x8xf32> to vector<2x8x1xf32>
    %21 = tpu.reciprocal %20 {approx = true} : vector<2x8x1xf32> -> vector<2x8x1xf32>
    %22 = vector.broadcast %21 : vector<2x8x1xf32> to vector<2x8x8xf32>
    %23 = arith.mulf %18, %22 : vector<2x8x8xf32>
    %cst_10 = arith.constant dense<0.000000e+00> : vector<2x8xf32>
    %24 = vector.multi_reduction <add>, %23, %cst_10 [1] : vector<2x8x8xf32> to vector<2x8xf32>
    %25 = vector.shape_cast %24 : vector<2x8xf32> to vector<2x1x8xf32>
    %cst_11 = arith.constant 8.000000e+00 : f32
    %26 = vector.broadcast %cst_11 : f32 to vector<2x1x8xf32>
    %27 = arith.divf %25, %26 : vector<2x1x8xf32>
    "tpu.trace_start"() <{level = 10 : i32, message = "bqs,bsd->bqd"}> : () -> ()
    %cst_12 = arith.constant dense<0.000000e+00> : vector<2x1x32xf32>
    %28 = tpu.matmul %27, %10, %cst_12 {dimension_numbers = #tpu.dot_dimension_numbers<[2], [1], [1], [2], [0, 0, 0, 1, 1, 2], [0], [0]>} : vector<2x1x8xf32>, vector<2x8x32xf32>, vector<2x1x32xf32> -> vector<2x1x32xf32>
    "tpu.trace_stop"() : () -> ()
    %29 = vector.shape_cast %28 : vector<2x1x32xf32> to vector<2x32xf32>
    %c0_13 = arith.constant 0 : index
    %c0_14 = arith.constant 0 : index
    %30 = vector.load %arg4[%c0_13, %c0_14] : memref<2x32xf32, #tpu.memory_space<vmem>>, vector<2x32xf32>
    tpu.vector_store %arg4[%c0_13, %c0_14], %29 {strides = array<i32>} : memref<2x32xf32, #tpu.memory_space<vmem>>, vector<2x32xf32>,
    return
  }
  func.func @transform_0(%arg0: i32) -> (i32, i32, i32) {
    %c0_i32 = arith.constant 0 : i32
    %c0_i32_0 = arith.constant 0 : i32
    %c0_i32_1 = arith.constant 0 : i32
    return %arg0, %c0_i32, %c0_i32_0 : i32, i32, i32
  }
  func.func @transform_1(%arg0: i32) -> (i32, i32) {
    %c0_i32 = arith.constant 0 : i32
    %c0_i32_0 = arith.constant 0 : i32
    %c0_i32_1 = arith.constant 0 : i32
    return %c0_i32, %c0_i32_0 : i32, i32
  }
  func.func @transform_2(%arg0: i32) -> (i32, i32) {
    %c0_i32 = arith.constant 0 : i32
    %c0_i32_0 = arith.constant 0 : i32
    %c0_i32_1 = arith.constant 0 : i32
    return %c0_i32, %c0_i32_0 : i32, i32
  }
  func.func @transform_3(%arg0: i32) -> (i32, i32) {
    %c0_i32 = arith.constant 0 : i32
    %c0_i32_0 = arith.constant 0 : i32
    return %arg0, %c0_i32 : i32, i32
  }
}

</mosaic_0001>

<bundles_post_ra>
// kernel: tpu_custom_call.1
= control target key start
LH: loop header
LB: loop body
LE: loop exit
PB: predicated region body
PF: predicated region fallthrough
CT: control target
= control target key end

     0   :  { %8 = vsyncpa [#allocation3], 0  ;;  %s426_s0 = inlined_call_operand.hbm [shape: f32[2,8,32], index: 0, kind: input, shape index: {}]   ;;  %s427_s1 = inlined_call_operand.hbm [shape: f32[32,96], index: 1, kind: input, shape index: {}]   ;;  %s428_s2 = inlined_call_operand.vmem [shape: f32[1,96], index: 2, kind: input, shape index: {}]   ;;  %s429_s3 = inlined_call_operand.hbm [shape: f32[2,32], index: 3, kind: output, shape index: {}]  }
   0x1   :  { %9 = vsyncpa [#allocation6], 0 }
   0x2   :  { %10 = vsyncpa [#allocation4], 0  ;;  %s15_s14 = sshll.u32 %s426_s0, 4  ;;  %s372_s15 = smov [#allocation2]   ;;  %s16_s14 = int_to_ptr.hbm [resolvable:$true] %s15_s14 }
   0x3   :  { %s17_s16 = sshll.u32 %s372_s15, 4  ;;  %s28_s19 = sshll.u32 %s427_s1, 4  ;;  %s18_s16 = int_to_ptr.vmem [resolvable:$true] %s17_s16  ;;  %s29_s19 = int_to_ptr.hbm [resolvable:$true] %s28_s19 }
   0x4   :  { %s373_s20 = smov 128   ;;  %s374_s21 = smov 8  }
   0x5   :  { %23 = dma.hbm_to_vmem [thread:$0]  %s16_s14, 256, %s18_s16, [#allocation3], %s373_s20, %s373_s20, %s374_s21  }
   0x6   :  { %s375_s22 = smov [#allocation5]  }
   0x7   :  { %s30_s23 = sshll.u32 %s375_s22, 4  ;;  %s31_s23 = int_to_ptr.vmem [resolvable:$true] %s30_s23 }
   0x8   :  { %36 = dma.hbm_to_vmem [thread:$0]  %s29_s19, 512, %s31_s23, [#allocation6], %s373_s20, %s373_s20, %s374_s21  }
   0x9   :  { %366 = dma.done.wait [#allocation3], 256  }
   0xa   :  { %367 = vsyncadd [#allocation3], 4294967040 }
   0xb   :  { %368 = dma.done.wait [#allocation6], 512  }
   0xc   :  { %369 = vsyncadd [#allocation6], 4294966784  ;;  %v52_v0 = vld [vmem:[#allocation5 + $0x18] sm:$0xff]  ;;  %v51_v1 = vld [vmem:[#allocation5 + $0x10] sm:$0xff]  ;;  %vm57_vm0 = vcmask 261120   ;;  %s376_s24 = smov 96  }
   0xd   :  { %76 = vmatpush.msra.mxu0 %v52_v0  ;;  %v50_v2 = vld [vmem:[#allocation5 + $0x8] sm:$0xff]  ;;  %v49_v3 = vld [vmem:[#allocation5] sm:$0xff]  ;;  %v47_v4 = vld [vmem:[#allocation2] sm:$0xff]  ;;  %s377_s25 = smov 64   ;;  %vm143_vm1 = vcmask 64512   ;;  %v378_v31 = vmov 8.0  }
   0xe   :  { %v48_v5 = vld [vmem:[#allocation2 + $0x8] sm:$0xff]  ;;  %v283_v6 = vld [vmem:[%s428_s2] ss:$0 sm:$0xff]  ;;  %s379_s2 = smov [#allocation7]   ;;  %s256_s29 = sshll.u32 %s429_s3, 4  ;;  %vm244_vm3 = vcmask 1041409   ;;  %s257_s29 = int_to_ptr.hbm [resolvable:$true] %s256_s29 }
   0xf   :  { %77 = vmatpush.msra.mxu0 %v51_v1  ;;  %s254_s26 = sshll.u32 %s379_s2, 4  ;;  %vm247_vm4 = vcmask 254976   ;;  %s255_s26 = int_to_ptr.vmem [resolvable:$true] %s254_s26 }
  0x11   :  { %78 = vmatpush.msra.mxu0 %v50_v2 }
  0x13   :  { %79 = vmatpush.msra.mxu0 %v49_v3 }
  0x14   :  { %267 = vmatmul.msk.f32.vlgmr.msra.gmra.mxu0 %vm57_vm0, %v47_v4 }
  0x1c   :  { %268 = vmatmul.msk.f32.gmra.mxu0 %vm57_vm0, %v48_v5 }
  0x91   :  { %v81_v7 = vpop.f32.mrf.mxu0 }
  0x92   :  { %v82_v8 = vadd.f32 %v283_v6, %v81_v7 }
  0x94   :  { %88 = vrot.lane.b32.xlu0 %v82_v8, %s376_s24 }
  0x99   :  { %v84_v9 = vpop.f32.mrf.mxu0 }
  0x9a   :  { %v85_v10 = vadd.f32 %v283_v6, %v84_v9 }
  0x9c   :  { %115 = vrot.lane.b32.xlu0 %v85_v10, %s376_s24 }
  0xa4   :  { %189 = vrot.lane.b32.xlu0 %v82_v8, %s377_s25 }
 0x106   :  { %v89_v11 = vpop.permute.xlu0 %88 }
 0x107   :  { %269 = vmatpush.xpose.msk.msra.mxu1 %vm57_vm0, %v89_v11 }
 0x10a   :  { %270 = vmatmul.msk.f32.vlgmr.msra.gmra.mxu1 %vm57_vm0, %v82_v8 }
 0x10e   :  { %v116_v12 = vpop.permute.xlu0 %115 }
 0x10f   :  { %271 = vmatpush.xpose.msk.msra.mxu2 %vm57_vm0, %v116_v12 }
 0x112   :  { %272 = vmatmul.msk.f32.vlgmr.msra.gmra.mxu2 %vm57_vm0, %v85_v10 }
 0x116   :  { %v190_v13 = vpop.permute.xlu0 %189 }
 0x117   :  { %210 = vmatpush.msra.mxu3 %v190_v13 }
 0x187   :  { %v111_v14 = vpop.f32.mrf.mxu1 }
 0x188   :  { %v141_v15 = vmul.f32 0.17677669, %v111_v14 }
 0x18a   :  { %v144_v16 = vsel %vm143_vm1, %v141_v15, -inf }
 0x18b   :  { %145 = vmax.xlane.f32.xlu1 %v144_v16 }
 0x195   :  { %v138_v17 = vpop.f32.mrf.mxu2 }
 0x196   :  { %v142_v18 = vmul.f32 0.17677669, %v138_v17 }
 0x198   :  { %v147_v19 = vsel %vm143_vm1, %v142_v18, -inf }
 0x199   :  { %148 = vmax.xlane.f32.xlu1 %v147_v19 }
 0x1b2   :  { %215 = vrot.lane.b32.xlu1 %v85_v10, %s377_s25 }
 0x1fe   :  { %v146_v20 = vpop.xlane.xlu1 %145 }
 0x1ff   :  { %v150_v21 = vsub.f32 %v141_v15, %v146_v20 }
 0x201   :  { %v152_v22 = vmul.f32 1.442695, %v150_v21 }
 0x203   :  { %284 = vpow2.f32 %v152_v22 }
 0x209   :  { %v285_v23 = vpop.eup %284 }
 0x20a   :  { %v156_v24 = vsel %vm143_vm1, %v285_v23, 0.0 }
 0x20b   :  { %157 = vadd.xlane.f32.xlu2 %v156_v24 }
 0x20c   :  { %v149_v25 = vpop.xlane.xlu1 %148 }
 0x20d   :  { %v151_v26 = vsub.f32 %v142_v18, %v149_v25 }
 0x20f   :  { %v154_v27 = vmul.f32 1.442695, %v151_v26 }
 0x211   :  { %286 = vpow2.f32 %v154_v27 }
 0x212   :  { %288 = vrcp.f32 %v378_v31 }
 0x217   :  { %v287_v28 = vpop.eup %286 }
 0x218   :  { %v159_v29 = vsel %vm143_vm1, %v287_v28, 0.0  ;;  %v289_v33 = vpop.eup %288 }
 0x219   :  { %160 = vadd.xlane.f32.xlu2 %v159_v29  ;;  %v181_v34 = vmul.f32 8.0, %v289_v33  ;;  %vm185_vm2 = vweird.f32 %v289_v33 }
 0x21b   :  { %v182_v37 = vsub.f32 1.0, %v181_v34 }
 0x21d   :  { %v183_v40 = vmul.f32 %v289_v33, %v182_v37 }
 0x21f   :  { %v184_v44 = vadd.f32 %v289_v33, %v183_v40 }
 0x221   :  { %v186_v47 = vsel %vm185_vm2, %v289_v33, %v184_v44 }
 0x224   :  { %v216_v30 = vpop.permute.xlu1 %215 }
 0x225   :  { %236 = vmatpush.msrb.mxu3 %v216_v30 }
 0x27e   :  { %v158_v32 = vpop.xlane.xlu2 %157 }
 0x27f   :  { %290 = vrcp.f32 %v158_v32 }
 0x285   :  { %v291_v35 = vpop.eup %290 }
 0x286   :  { %v164_v36 = vmul.f32 %v291_v35, %v285_v23 }
 0x288   :  { %v166_v38 = vsel %vm143_vm1, %v164_v36, 0.0 }
 0x289   :  { %v167_v39 = vrot.slane %v166_v38, 4 }
 0x28b   :  { %v168_v41 = vadd.f32 %v167_v39, %v166_v38 }
 0x28c   :  { %v161_v42 = vpop.xlane.xlu2 %160 }
 0x28d   :  { %292 = vrcp.f32 %v161_v42  ;;  %v169_v43 = vrot.slane %v168_v41, 2 }
 0x28f   :  { %v170_v45 = vadd.f32 %v169_v43, %v168_v41 }
 0x291   :  { %v171_v46 = vrot.slane %v170_v45, 1 }
 0x293   :  { %v293_v48 = vpop.eup %292  ;;  %v172_v49 = vadd.f32 %v171_v46, %v170_v45 }
 0x294   :  { %v165_v50 = vmul.f32 %v293_v48, %v287_v28 }
 0x295   :  { %v187_v51 = vmul.f32 %v186_v47, %v172_v49 }
 0x296   :  { %v173_v52 = vsel %vm143_vm1, %v165_v50, 0.0 }
 0x297   :  { %v174_v53 = vrot.slane %v173_v52, 4  ;;  %273 = vmatmul.msk.f32.vlgmr.msra.gmra.mxu3 %vm143_vm1, %v187_v51 }
 0x299   :  { %v175_v54 = vadd.f32 %v174_v53, %v173_v52 }
 0x29b   :  { %v176_v55 = vrot.slane %v175_v54, 2 }
 0x29d   :  { %v177_v56 = vadd.f32 %v176_v55, %v175_v54 }
 0x29f   :  { %v178_v57 = vrot.slane %v177_v56, 1 }
 0x2a1   :  { %v179_v58 = vadd.f32 %v178_v57, %v177_v56 }
 0x2a3   :  { %v188_v59 = vmul.f32 %v186_v47, %v179_v58 }
 0x2a5   :  { %274 = vmatmul.msk.f32.vlgmr.msrb.gmra.mxu3 %vm143_vm1, %v188_v59 }
 0x31a   :  { %v212_v60 = vpop.f32.mrf.mxu3 }
 0x328   :  { %v238_v61 = vpop.f32.mrf.mxu3 }
 0x329   :  { %v243_v62 = vrot.slane %v238_v61, 7 }
 0x32b   :  { %v245_v63 = vsel %vm244_vm3, %v243_v62, %v212_v60 }
 0x32c   :  { %248 = vst.msk [vmem:[#allocation7] sm:$0x3] %vm247_vm4, %v245_v63 }
 0x32d   :  { %259 = dma.vmem_to_hbm [thread:$0]  %s255_s26, 32, %s257_s29, [#allocation4]  }
 0x32e   :  { %370 = dma.done.wait [#allocation4], 32  }
 0x32f   :  { %371 = vsyncadd [#allocation4], 4294967264 }
 0x330   :  { %264 = vsyncpa [#allocation3], 1 }
 0x331   :  { %265 = vsyncpa [#allocation6], 1 }
 0x332   :  { %266 = vsyncpa [#allocation4], 1 }

</bundles_post_ra>
